<compile_context>
chip_gen: v6e
topology: v6e:2x2x1
jax: 0.10.0
libtpu: 0.0.40
codegen_flags: <defaults>
</compile_context>

<pallas_src>
import functools
from typing import List, NamedTuple, Tuple

import jax
import jax.numpy as jnp
from jax.experimental import pallas as pl
from jax.experimental.pallas import tpu as pltpu


def _round_up(n: int, m: int) -> int:
    return ((n + m - 1) // m) * m


class PackedActorParams(NamedTuple):
    w_slab: jax.Array              # [L, P, P], compute dtype, zero padded
    b_slab: jax.Array              # [L, P],   float32,       zero padded
    dims: Tuple[int, ...]          # (in0, h0, h1, h2, out)
    padded_dims: Tuple[int, ...]   # (in0, roundup128(h0), ..., roundup128(out))
    compute_dtype: object


def pack_actor_params(params, use_bf16: bool = True) -> PackedActorParams:
    """Pack [(W[in,out], b[1,out]), ...] ONCE into resident VMEM slabs.

    Call at init time, not per forward — this is the expensive wrapper work
    (L scatter-updates + dtype casts) that used to run on every call.
    Padded columns of the bias slab MUST stay zero (tanh(0)=0 propagation).
    """
    num_layers = len(params)
    dims = tuple([params[0][0].shape[0]] + [w.shape[1] for w, _ in params])
    # Per-layer padded widths: layer-0 K is the raw input width (matches the
    # streamed x block); every other width is rounded to the 128-lane grid.
    padded_dims = (dims[0],) + tuple(_round_up(d, 128) for d in dims[1:])
    P = max(_round_up(d, 128) for d in dims)

    compute_dtype = jnp.bfloat16 if use_bf16 else jnp.float32
    w_slab = jnp.zeros((num_layers, P, P), compute_dtype)
    b_slab = jnp.zeros((num_layers, P), jnp.float32)
    for i, (w, b) in enumerate(params):
        w_slab = w_slab.at[i, : w.shape[0], : w.shape[1]].set(
            w.astype(compute_dtype))
        b_slab = b_slab.at[i, : b.shape[-1]].set(
            b.reshape(-1).astype(jnp.float32))
    return PackedActorParams(w_slab, b_slab, dims, padded_dims, compute_dtype)


def _tanh_dtype_for_backend(compute_dtype):
    """bf16 tanh only where the VPU/EUP support it (v6e / v7x)."""
    if compute_dtype == jnp.float32:
        return jnp.float32
    try:
        kind = jax.devices()[0].device_kind.lower()
    except Exception:
        kind = ""
    if "v6" in kind or "v7" in kind:
        return jnp.bfloat16
    return jnp.float32  # v5e / v4 / unknown: f32-only VPU & EUP


def _actor_mlp_kernel(x_ref, w_ref, b_ref, o_ref, *, padded_dims,
                      compute_dtype, tanh_dtype):
    # x_ref: (TILE_B, in0)  w_ref: (L, P, P)  b_ref: (L, P)  o_ref: (TILE_B, out_p)
    num_layers = len(padded_dims) - 1
    h = x_ref[...]
    for i in range(num_layers):
        k, n = padded_dims[i], padded_dims[i + 1]          # static widths
        z = jnp.dot(h, w_ref[i, :k, :n],
                    preferred_element_type=jnp.float32)    # MXU, f32 accumulate
        z = z + b_ref[i:i + 1, :n]                         # bias-add in f32
        if i + 1 < num_layers:
            # tanh in bf16 halves EUP pushes on v6e/v7x; f32 elsewhere.
            h = jnp.tanh(z.astype(tanh_dtype)).astype(compute_dtype)
        else:
            h = jnp.tanh(z)                                # final tanh in f32
    o_ref[...] = h.astype(o_ref.dtype)


_SINGLE_BUFFER_RESIDENT_OK = None  # cache: does pl.Buffered(1) compile here?


def _resident_spec_kwargs(single_buffer):
    if single_buffer and hasattr(pl, "Buffered"):
        return {"pipeline_mode": pl.Buffered(1)}
    return {}


def actor_mlp_forward(x, packed: PackedActorParams, *, max_tile_b: int = 4096,
                      min_grid_steps: int = 2):
    """x: [B, input_size]; returns float32 [B, output_size]."""
    global _SINGLE_BUFFER_RESIDENT_OK

    B, in0 = x.shape
    dims, padded_dims = packed.dims, packed.padded_dims
    assert in0 == dims[0], "input width mismatch with packed params"
    num_layers = len(dims) - 1
    out_size, out_p = dims[-1], padded_dims[-1]
    P = packed.w_slab.shape[-1]
    compute_dtype = packed.compute_dtype
    itemsize = jnp.dtype(compute_dtype).itemsize

    # Batch tiling: big tiles amortize the ~0.35us/step overhead, but keep at
    # least `min_grid_steps` steps so the "parallel" axis can shard across both
    # v7x TensorCores and the input/output DMA pipeline stays warm.
    tile_b = min(max_tile_b,
                 max(8, _round_up(pl.cdiv(max(B, 1), min_grid_steps), 8)))
    b_pad = pl.cdiv(B, tile_b) * tile_b
    x_in = x.astype(compute_dtype)
    if b_pad != B:
        x_in = jnp.pad(x_in, ((0, b_pad - B), (0, 0)))
    grid = (b_pad // tile_b,)

    kernel = functools.partial(
        _actor_mlp_kernel, padded_dims=padded_dims,
        compute_dtype=compute_dtype,
        tanh_dtype=_tanh_dtype_for_backend(compute_dtype))

    cost = pl.CostEstimate(
        flops=2 * b_pad * sum(padded_dims[i] * padded_dims[i + 1]
                              for i in range(num_layers)),
        transcendentals=b_pad * sum(padded_dims[1:]),
        bytes_accessed=(b_pad * in0 * itemsize          # x stream
                        + packed.w_slab.size * itemsize  # resident weights
                        + packed.b_slab.size * 4         # resident biases
                        + b_pad * out_p * 4),            # lane-dense f32 output
    )

    def vmem_limit(single_buffer):
        x_buf = 2 * tile_b * _round_up(in0, 128) * itemsize     # x double buffer
        o_buf = 2 * tile_b * out_p * 4                          # out double buffer
        n_res = 1 if single_buffer else 2
        resident = n_res * (packed.w_slab.size * itemsize
                            + _round_up(num_layers, 8) * P * 4)
        temps = 4 * tile_b * P * 4                              # z / h temporaries
        return int(max(x_buf + o_buf + resident + temps + (8 << 20), 16 << 20))

    def run(single_buffer):
        return pl.pallas_call(
            kernel,
            out_shape=jax.ShapeDtypeStruct((b_pad, out_p), jnp.float32),
            grid_spec=pltpu.PrefetchScalarGridSpec(
                num_scalar_prefetch=0,
                grid=grid,
                in_specs=[
                    # streamed activations: one batch tile per grid step
                    pl.BlockSpec((tile_b, in0), lambda i: (i, 0)),
                    # packed weights / biases: constant block -> stay resident;
                    # single-buffered when supported (never re-fetched).
                    pl.BlockSpec((num_layers, P, P), lambda i: (0, 0, 0),
                                 **_resident_spec_kwargs(single_buffer)),
                    pl.BlockSpec((num_layers, P), lambda i: (0, 0),
                                 **_resident_spec_kwargs(single_buffer)),
                ],
                out_specs=pl.BlockSpec((tile_b, out_p), lambda i: (i, 0)),
            ),
            compiler_params=pltpu.CompilerParams(
                dimension_semantics=("parallel",),   # megacore sharding on v7x
                vmem_limit_bytes=vmem_limit(single_buffer),
            ),
            cost_estimate=cost,
        )(x_in, packed.w_slab, packed.b_slab)

    if _SINGLE_BUFFER_RESIDENT_OK is None:
        try:
            out = run(True)
            _SINGLE_BUFFER_RESIDENT_OK = True
        except Exception:
            _SINGLE_BUFFER_RESIDENT_OK = False
            out = run(False)
    else:
        out = run(_SINGLE_BUFFER_RESIDENT_OK)

    return out[:B, :out_size]


def init_linear_params(key, in_features, out_features, dtype=jnp.float32):
    """PyTorch-style uniform(-1/sqrt(in), 1/sqrt(in)) init; W stored [in, out]."""
    kw, kb = jax.random.split(key)
    bound = 1.0 / jnp.sqrt(jnp.float32(in_features))
    w = jax.random.uniform(kw, (in_features, out_features), dtype,
                           minval=-bound, maxval=bound)
    b = jax.random.uniform(kb, (1, out_features), dtype,
                           minval=-bound, maxval=bound)
    return w, b


def reference_forward(x, params):
    h = x
    for w, b in params:
        h = jnp.tanh(h @ w + b)
    return h


if __name__ == "__main__":
    # Shapes consistent with ActorMLP(input_size, hidden_size=[h0,h1,h2], output_size)
    batch = 2
    input_size = 16
    hidden_size = [32, 32, 32]
    output_size = 8

    key = jax.random.PRNGKey(0)
    kx, k1, k2, k3, k4, kx2 = jax.random.split(key, 6)

    dims = [input_size] + hidden_size + [output_size]
    layer_keys = [k1, k2, k3, k4]
    params = [init_linear_params(layer_keys[i], dims[i], dims[i + 1])
              for i in range(4)]

    # Pack once (hoisted out of the forward path).
    packed_bf16 = pack_actor_params(params, use_bf16=True)    # default fast path
    packed_f32 = pack_actor_params(params, use_bf16=False)    # strict path

    # --- small batch (B=2), f32 path, strict correctness check ---
    x = jax.random.normal(kx, (batch, input_size), jnp.float32)
    ref = reference_forward(x, params)
    out_f32 = jax.block_until_ready(actor_mlp_forward(x, packed_f32))
    assert out_f32.shape == (batch, output_size)
    assert jnp.allclose(out_f32, ref, atol=1e-5, rtol=1e-5), "f32 mismatch"

    # --- bf16 default path, explicit tolerance check (not just isfinite) ---
    out_bf16 = jax.block_until_ready(actor_mlp_forward(x, packed_bf16))
    assert out_bf16.shape == (batch, output_size)
    assert jnp.allclose(out_bf16, ref, atol=3e-2, rtol=3e-2), "bf16 mismatch"

    # --- ragged multi-tile grid (B=300, TILE_B=128 -> grid of 3) ---
    x_big = jax.random.normal(kx2, (300, input_size), jnp.float32)
    ref_big = reference_forward(x_big, params)
    out_big_f32 = jax.block_until_ready(
        actor_mlp_forward(x_big, packed_f32, max_tile_b=128))
    assert out_big_f32.shape == (300, output_size)
    assert jnp.allclose(out_big_f32, ref_big, atol=1e-5, rtol=1e-5), "grid f32"
    out_big_bf16 = jax.block_until_ready(
        actor_mlp_forward(x_big, packed_bf16, max_tile_b=128))
    assert out_big_bf16.shape == (300, output_size)
    assert jnp.allclose(out_big_bf16, ref_big, atol=3e-2, rtol=3e-2), "grid bf16"

    # --- default tiling (>=2 grid steps target) on the bigger batch ---
    out_def = jax.block_until_ready(actor_mlp_forward(x_big, packed_bf16))
    assert jnp.allclose(out_def, ref_big, atol=3e-2, rtol=3e-2), "default tile"

    print("KERNEL_OK")
</pallas_src>

<mosaic_0001>
module attributes {stable_mosaic.version = 11 : i64} {
  func.func @_actor_mlp_kernel(%arg0: i32, %arg1: memref<8x16xf32, #tpu.memory_space<vmem>>, %arg2: memref<4x128x128xf32, #tpu.memory_space<vmem>>, %arg3: memref<4x128xf32, #tpu.memory_space<vmem>>, %arg4: memref<8x128xf32, #tpu.memory_space<vmem>>) attributes {dimension_semantics = [#tpu.dimension_semantics<parallel>], iteration_bounds = array<i64: 1>, scalar_prefetch = 0 : i64, scratch_operands = 0 : i64, tpu.core_type = #tpu.core_type<tc>, window_params = [{transform_indices = @transform_0, window_bounds = array<i64: 8, 16>}, {pipeline_mode = #tpu.pipeline_mode<synchronous>, transform_indices = @transform_1, window_bounds = array<i64: 4, 128, 128>}, {pipeline_mode = #tpu.pipeline_mode<synchronous>, transform_indices = @transform_2, window_bounds = array<i64: 4, 128>}, {transform_indices = @transform_3, window_bounds = array<i64: 8, 128>}]} {
    %c0 = arith.constant 0 : index
    %c0_0 = arith.constant 0 : index
    %0 = vector.load %arg1[%c0, %c0_0] : memref<8x16xf32, #tpu.memory_space<vmem>>, vector<8x16xf32>
    %c0_1 = arith.constant 0 : index
    %c0_2 = arith.constant 0 : index
    %c0_3 = arith.constant 0 : index
    %1 = vector.load %arg2[%c0_1, %c0_2, %c0_3] : memref<4x128x128xf32, #tpu.memory_space<vmem>>, vector<1x16x128xf32>
    %2 = vector.shape_cast %1 : vector<1x16x128xf32> to vector<16x128xf32>
    %cst = arith.constant dense<0.000000e+00> : vector<8x128xf32>
    %3 = tpu.matmul %0, %2, %cst {dimension_numbers = #tpu.dot_dimension_numbers<[1], [0], [0], [1], [0, 0, 1, 1], [], []>} : vector<8x16xf32>, vector<16x128xf32>, vector<8x128xf32> -> vector<8x128xf32>
    %c0_4 = arith.constant 0 : index
    %c0_5 = arith.constant 0 : index
    %4 = vector.load %arg3[%c0_4, %c0_5] : memref<4x128xf32, #tpu.memory_space<vmem>>, vector<1x128xf32>
    %5 = vector.broadcast %4 : vector<1x128xf32> to vector<8x128xf32>
    %6 = arith.addf %3, %5 : vector<8x128xf32>
    %7 = math.tanh %6 : vector<8x128xf32>
    %c1 = arith.constant 1 : index
    %c0_6 = arith.constant 0 : index
    %c0_7 = arith.constant 0 : index
    %8 = vector.load %arg2[%c1, %c0_6, %c0_7] : memref<4x128x128xf32, #tpu.memory_space<vmem>>, vector<1x128x128xf32>
    %9 = vector.shape_cast %8 : vector<1x128x128xf32> to vector<128x128xf32>
    %cst_8 = arith.constant dense<0.000000e+00> : vector<8x128xf32>
    %10 = tpu.matmul %7, %9, %cst_8 {dimension_numbers = #tpu.dot_dimension_numbers<[1], [0], [0], [1], [0, 0, 1, 1], [], []>} : vector<8x128xf32>, vector<128x128xf32>, vector<8x128xf32> -> vector<8x128xf32>
    %c1_9 = arith.constant 1 : index
    %c0_10 = arith.constant 0 : index
    %11 = vector.load %arg3[%c1_9, %c0_10] : memref<4x128xf32, #tpu.memory_space<vmem>>, vector<1x128xf32>
    %12 = vector.broadcast %11 : vector<1x128xf32> to vector<8x128xf32>
    %13 = arith.addf %10, %12 : vector<8x128xf32>
    %14 = math.tanh %13 : vector<8x128xf32>
    %c2 = arith.constant 2 : index
    %c0_11 = arith.constant 0 : index
    %c0_12 = arith.constant 0 : index
    %15 = vector.load %arg2[%c2, %c0_11, %c0_12] : memref<4x128x128xf32, #tpu.memory_space<vmem>>, vector<1x128x128xf32>
    %16 = vector.shape_cast %15 : vector<1x128x128xf32> to vector<128x128xf32>
    %cst_13 = arith.constant dense<0.000000e+00> : vector<8x128xf32>
    %17 = tpu.matmul %14, %16, %cst_13 {dimension_numbers = #tpu.dot_dimension_numbers<[1], [0], [0], [1], [0, 0, 1, 1], [], []>} : vector<8x128xf32>, vector<128x128xf32>, vector<8x128xf32> -> vector<8x128xf32>
    %c2_14 = arith.constant 2 : index
    %c0_15 = arith.constant 0 : index
    %18 = vector.load %arg3[%c2_14, %c0_15] : memref<4x128xf32, #tpu.memory_space<vmem>>, vector<1x128xf32>
    %19 = vector.broadcast %18 : vector<1x128xf32> to vector<8x128xf32>
    %20 = arith.addf %17, %19 : vector<8x128xf32>
    %21 = math.tanh %20 : vector<8x128xf32>
    %c3 = arith.constant 3 : index
    %c0_16 = arith.constant 0 : index
    %c0_17 = arith.constant 0 : index
    %22 = vector.load %arg2[%c3, %c0_16, %c0_17] : memref<4x128x128xf32, #tpu.memory_space<vmem>>, vector<1x128x128xf32>
    %23 = vector.shape_cast %22 : vector<1x128x128xf32> to vector<128x128xf32>
    %cst_18 = arith.constant dense<0.000000e+00> : vector<8x128xf32>
    %24 = tpu.matmul %21, %23, %cst_18 {dimension_numbers = #tpu.dot_dimension_numbers<[1], [0], [0], [1], [0, 0, 1, 1], [], []>} : vector<8x128xf32>, vector<128x128xf32>, vector<8x128xf32> -> vector<8x128xf32>
    %c3_19 = arith.constant 3 : index
    %c0_20 = arith.constant 0 : index
    %25 = vector.load %arg3[%c3_19, %c0_20] : memref<4x128xf32, #tpu.memory_space<vmem>>, vector<1x128xf32>
    %26 = vector.broadcast %25 : vector<1x128xf32> to vector<8x128xf32>
    %27 = arith.addf %24, %26 : vector<8x128xf32>
    %28 = math.tanh %27 : vector<8x128xf32>
    %c0_21 = arith.constant 0 : index
    %c0_22 = arith.constant 0 : index
    %29 = vector.load %arg4[%c0_21, %c0_22] : memref<8x128xf32, #tpu.memory_space<vmem>>, vector<8x128xf32>
    tpu.vector_store %arg4[%c0_21, %c0_22], %28 {strides = array<i32>} : memref<8x128xf32, #tpu.memory_space<vmem>>, vector<8x128xf32>,
    return
  }
  func.func @transform_0(%arg0: i32) -> (i32, i32) {
    %c0_i32 = arith.constant 0 : i32
    %c0_i32_0 = arith.constant 0 : i32
    return %arg0, %c0_i32 : i32, i32
  }
  func.func @transform_1(%arg0: i32) -> (i32, i32, i32) {
    %c0_i32 = arith.constant 0 : i32
    %c0_i32_0 = arith.constant 0 : i32
    %c0_i32_1 = arith.constant 0 : i32
    %c0_i32_2 = arith.constant 0 : i32
    return %c0_i32, %c0_i32_0, %c0_i32_1 : i32, i32, i32
  }
  func.func @transform_2(%arg0: i32) -> (i32, i32) {
    %c0_i32 = arith.constant 0 : i32
    %c0_i32_0 = arith.constant 0 : i32
    %c0_i32_1 = arith.constant 0 : i32
    return %c0_i32, %c0_i32_0 : i32, i32
  }
  func.func @transform_3(%arg0: i32) -> (i32, i32) {
    %c0_i32 = arith.constant 0 : i32
    %c0_i32_0 = arith.constant 0 : i32
    return %arg0, %c0_i32 : i32, i32
  }
}

module attributes {stable_mosaic.version = 11 : i64} {
  func.func @_actor_mlp_kernel(%arg0: i32, %arg1: memref<8x16xf32, #tpu.memory_space<vmem>>, %arg2: memref<4x128x128xf32, #tpu.memory_space<vmem>>, %arg3: memref<4x128xf32, #tpu.memory_space<vmem>>, %arg4: memref<8x128xf32, #tpu.memory_space<vmem>>) attributes {dimension_semantics = [#tpu.dimension_semantics<parallel>], iteration_bounds = array<i64: 1>, scalar_prefetch = 0 : i64, scratch_operands = 0 : i64, tpu.core_type = #tpu.core_type<tc>, window_params = [{transform_indices = @transform_0, window_bounds = array<i64: 8, 16>}, {pipeline_mode = #tpu.pipeline_mode<synchronous>, transform_indices = @transform_1, window_bounds = array<i64: 4, 128, 128>}, {pipeline_mode = #tpu.pipeline_mode<synchronous>, transform_indices = @transform_2, window_bounds = array<i64: 4, 128>}, {transform_indices = @transform_3, window_bounds = array<i64: 8, 128>}]} {
    %c0 = arith.constant 0 : index
    %c0_0 = arith.constant 0 : index
    %0 = vector.load %arg1[%c0, %c0_0] : memref<8x16xf32, #tpu.memory_space<vmem>>, vector<8x16xf32>
    %c0_1 = arith.constant 0 : index
    %c0_2 = arith.constant 0 : index
    %c0_3 = arith.constant 0 : index
    %1 = vector.load %arg2[%c0_1, %c0_2, %c0_3] : memref<4x128x128xf32, #tpu.memory_space<vmem>>, vector<1x16x128xf32>
    %2 = vector.shape_cast %1 : vector<1x16x128xf32> to vector<16x128xf32>
    %cst = arith.constant dense<0.000000e+00> : vector<8x128xf32>
    %3 = tpu.matmul %0, %2, %cst {dimension_numbers = #tpu.dot_dimension_numbers<[1], [0], [0], [1], [0, 0, 1, 1], [], []>} : vector<8x16xf32>, vector<16x128xf32>, vector<8x128xf32> -> vector<8x128xf32>
    %c0_4 = arith.constant 0 : index
    %c0_5 = arith.constant 0 : index
    %4 = vector.load %arg3[%c0_4, %c0_5] : memref<4x128xf32, #tpu.memory_space<vmem>>, vector<1x128xf32>
    %5 = vector.broadcast %4 : vector<1x128xf32> to vector<8x128xf32>
    %6 = arith.addf %3, %5 : vector<8x128xf32>
    %7 = math.tanh %6 : vector<8x128xf32>
    %c1 = arith.constant 1 : index
    %c0_6 = arith.constant 0 : index
    %c0_7 = arith.constant 0 : index
    %8 = vector.load %arg2[%c1, %c0_6, %c0_7] : memref<4x128x128xf32, #tpu.memory_space<vmem>>, vector<1x128x128xf32>
    %9 = vector.shape_cast %8 : vector<1x128x128xf32> to vector<128x128xf32>
    %cst_8 = arith.constant dense<0.000000e+00> : vector<8x128xf32>
    %10 = tpu.matmul %7, %9, %cst_8 {dimension_numbers = #tpu.dot_dimension_numbers<[1], [0], [0], [1], [0, 0, 1, 1], [], []>} : vector<8x128xf32>, vector<128x128xf32>, vector<8x128xf32> -> vector<8x128xf32>
    %c1_9 = arith.constant 1 : index
    %c0_10 = arith.constant 0 : index
    %11 = vector.load %arg3[%c1_9, %c0_10] : memref<4x128xf32, #tpu.memory_space<vmem>>, vector<1x128xf32>
    %12 = vector.broadcast %11 : vector<1x128xf32> to vector<8x128xf32>
    %13 = arith.addf %10, %12 : vector<8x128xf32>
    %14 = math.tanh %13 : vector<8x128xf32>
    %c2 = arith.constant 2 : index
    %c0_11 = arith.constant 0 : index
    %c0_12 = arith.constant 0 : index
    %15 = vector.load %arg2[%c2, %c0_11, %c0_12] : memref<4x128x128xf32, #tpu.memory_space<vmem>>, vector<1x128x128xf32>
    %16 = vector.shape_cast %15 : vector<1x128x128xf32> to vector<128x128xf32>
    %cst_13 = arith.constant dense<0.000000e+00> : vector<8x128xf32>
    %17 = tpu.matmul %14, %16, %cst_13 {dimension_numbers = #tpu.dot_dimension_numbers<[1], [0], [0], [1], [0, 0, 1, 1], [], []>} : vector<8x128xf32>, vector<128x128xf32>, vector<8x128xf32> -> vector<8x128xf32>
    %c2_14 = arith.constant 2 : index
    %c0_15 = arith.constant 0 : index
    %18 = vector.load %arg3[%c2_14, %c0_15] : memref<4x128xf32, #tpu.memory_space<vmem>>, vector<1x128xf32>
    %19 = vector.broadcast %18 : vector<1x128xf32> to vector<8x128xf32>
    %20 = arith.addf %17, %19 : vector<8x128xf32>
    %21 = math.tanh %20 : vector<8x128xf32>
    %c3 = arith.constant 3 : index
    %c0_16 = arith.constant 0 : index
    %c0_17 = arith.constant 0 : index
    %22 = vector.load %arg2[%c3, %c0_16, %c0_17] : memref<4x128x128xf32, #tpu.memory_space<vmem>>, vector<1x128x128xf32>
    %23 = vector.shape_cast %22 : vector<1x128x128xf32> to vector<128x128xf32>
    %cst_18 = arith.constant dense<0.000000e+00> : vector<8x128xf32>
    %24 = tpu.matmul %21, %23, %cst_18 {dimension_numbers = #tpu.dot_dimension_numbers<[1], [0], [0], [1], [0, 0, 1, 1], [], []>} : vector<8x128xf32>, vector<128x128xf32>, vector<8x128xf32> -> vector<8x128xf32>
    %c3_19 = arith.constant 3 : index
    %c0_20 = arith.constant 0 : index
    %25 = vector.load %arg3[%c3_19, %c0_20] : memref<4x128xf32, #tpu.memory_space<vmem>>, vector<1x128xf32>
    %26 = vector.broadcast %25 : vector<1x128xf32> to vector<8x128xf32>
    %27 = arith.addf %24, %26 : vector<8x128xf32>
    %28 = math.tanh %27 : vector<8x128xf32>
    %c0_21 = arith.constant 0 : index
    %c0_22 = arith.constant 0 : index
    %29 = vector.load %arg4[%c0_21, %c0_22] : memref<8x128xf32, #tpu.memory_space<vmem>>, vector<8x128xf32>
    tpu.vector_store %arg4[%c0_21, %c0_22], %28 {strides = array<i32>} : memref<8x128xf32, #tpu.memory_space<vmem>>, vector<8x128xf32>,
    return
  }
  func.func @transform_0(%arg0: i32) -> (i32, i32) {
    %c0_i32 = arith.constant 0 : i32
    %c0_i32_0 = arith.constant 0 : i32
    return %arg0, %c0_i32 : i32, i32
  }
  func.func @transform_1(%arg0: i32) -> (i32, i32, i32) {
    %c0_i32 = arith.constant 0 : i32
    %c0_i32_0 = arith.constant 0 : i32
    %c0_i32_1 = arith.constant 0 : i32
    %c0_i32_2 = arith.constant 0 : i32
    return %c0_i32, %c0_i32_0, %c0_i32_1 : i32, i32, i32
  }
  func.func @transform_2(%arg0: i32) -> (i32, i32) {
    %c0_i32 = arith.constant 0 : i32
    %c0_i32_0 = arith.constant 0 : i32
    %c0_i32_1 = arith.constant 0 : i32
    return %c0_i32, %c0_i32_0 : i32, i32
  }
  func.func @transform_3(%arg0: i32) -> (i32, i32) {
    %c0_i32 = arith.constant 0 : i32
    %c0_i32_0 = arith.constant 0 : i32
    return %arg0, %c0_i32 : i32, i32
  }
}

</mosaic_0001>

<bundles_post_ra>
// kernel: tpu_custom_call.1
= control target key start
LH: loop header
LB: loop body
LE: loop exit
PB: predicated region body
PF: predicated region fallthrough
CT: control target
= control target key end

     0   :  { %8 = vsyncpa [#allocation3], 0  ;;  %s802_s0 = inlined_call_operand.hbm [shape: f32[8,16], index: 0, kind: input, shape index: {}]   ;;  %s803_s1 = inlined_call_operand.hbm [shape: f32[4,128,128], index: 1, kind: input, shape index: {}]   ;;  %s804_s2 = inlined_call_operand.hbm [shape: f32[4,128], index: 2, kind: input, shape index: {}]   ;;  %s805_s3 = inlined_call_operand.hbm [shape: f32[8,128], index: 3, kind: output, shape index: {}]  }
   0x1   :  { %9 = vsyncpa [#allocation6], 0 }
   0x2   :  { %10 = vsyncpa [#allocation4], 0  ;;  %s704_s12 = smov [#allocation5]  }
   0x3   :  { %s26_s13 = sshll.u32 %s704_s12, 4  ;;  %s27_s13 = int_to_ptr.vmem [resolvable:$true] %s26_s13 }
   0x4   :  { %s626_s14 = scalar_lea.vmem %s27_s13, 8192  ;;  %p631_p1 = scmp.lt.s32.totalorder %s27_s13, %s27_s13 }
   0x5   :  { %p627_p0 = scmp.ne.s32.totalorder %s27_s13, %s626_s14  ;;  %p632_p2 = scmp.lt.s32.totalorder %s626_s14, %s626_s14 }
   0x7   :  { %p633_p3 = por %p632_p2, %p631_p1 }
   0x9   :  { %p634_p4 = pnand %p633_p3, %p627_p0 }
   0xb   :  { %637 = shalt.err (!%p634_p4)
}
   0xc   :  { %s705_s15 = smov 128   ;;  %s706_s16 = smov 8  }
   0xd   :  { %32 = dma.hbm_to_vmem [thread:$0]  %s803_s1, 8192, %s27_s13, [#allocation6], %s705_s15, %s705_s15, %s706_s16  }
   0xe   :  { %s707_s19 = smov [#allocation2]   ;;  %s708_s21 = smov [#allocation7]  }
   0xf   :  { %s17_s20 = sshll.u32 %s707_s19, 4  ;;  %s39_s22 = sshll.u32 %s708_s21, 4  ;;  %s18_s20 = int_to_ptr.vmem [resolvable:$true] %s17_s20  ;;  %s40_s22 = int_to_ptr.vmem [resolvable:$true] %s39_s22 }
  0x10   :  { %s646_s23 = scalar_lea.vmem %s18_s20, 128  ;;  %p651_p6 = scmp.lt.s32.totalorder %s18_s20, %s18_s20 }
  0x11   :  { %p647_p5 = scmp.ne.s32.totalorder %s18_s20, %s646_s23  ;;  %p652_p7 = scmp.lt.s32.totalorder %s646_s23, %s646_s23 }
  0x13   :  { %p653_p8 = por %p652_p7, %p651_p6 }
  0x15   :  { %p654_p9 = pnand %p653_p8, %p647_p5 }
  0x17   :  { %657 = shalt.err (!%p654_p9)
}
  0x18   :  { %20 = dma.hbm_to_vmem [thread:$0]  %s802_s0, 128, %s18_s20, [#allocation3]  }
  0x19   :  { %s666_s26 = scalar_lea.vmem %s40_s22, 64  ;;  %p671_p11 = scmp.lt.s32.totalorder %s40_s22, %s40_s22 }
  0x1a   :  { %p667_p10 = scmp.ne.s32.totalorder %s40_s22, %s666_s26  ;;  %p672_p12 = scmp.lt.s32.totalorder %s666_s26, %s666_s26 }
  0x1c   :  { %p673_p13 = por %p672_p12, %p671_p11 }
  0x1e   :  { %p674_p0 = pnand %p673_p13, %p667_p10 }
  0x20   :  { %677 = shalt.err (!%p674_p0)
}
  0x21   :  { %42 = dma.hbm_to_vmem [thread:$0]  %s804_s2, 64, %s40_s22, [#allocation6]  }
  0x22   :  { %698 = dma.done.wait [#allocation3], 128  }
  0x23   :  { %699 = vsyncadd [#allocation3], 4294967168 }
  0x24   :  { %700 = dma.done.wait [#allocation6], 8256  }
  0x25   :  { %701 = vsyncadd [#allocation6], 4294959040  ;;  %v709_v0 = vmov 0.0   ;;  %vm710_vm0 = vmmov 0   ;;  %v54_v1 = vld [vmem:[#allocation5 + $0x8] sm:$0xff]  ;;  %v53_v2 = vld [vmem:[#allocation5] sm:$0xff] }
  0x26   :  { %490 = vmatprep.subr.mxu0 %v709_v0  ;;  %494 = vmatprep.mubr.msk.f32.mxu0 %vm710_vm0, %v709_v0  ;;  %v52_v3 = vld [vmem:[#allocation2] sm:$0xff]  ;;  %vm60_vm1 = vcmask 130048   ;;  %v150_v5 = vld [vmem:[#allocation5 + $0xf0] sm:$0xff]  ;;  %v149_v6 = vld [vmem:[#allocation5 + $0xe8] sm:$0xff]  ;;  %s711_s0 = smov [#allocation8]  }
  0x27   :  { %497 = vmatprep.subr.mxu1 %v709_v0  ;;  %529 = vmatprep.mubr.msk.f32.mxu1 %vm710_vm0, %v709_v0  ;;  %v151_v4 = vld [vmem:[#allocation5 + $0xf8] sm:$0xff]  ;;  %v148_v7 = vld [vmem:[#allocation5 + $0xe0] sm:$0xff]  ;;  %v146_v9 = vld [vmem:[#allocation5 + $0xd0] sm:$0xff]  ;;  %s421_s2 = sshll.u32 %s711_s0, 4  ;;  %s422_s2 = int_to_ptr.vmem [resolvable:$true] %s421_s2 }
  0x28   :  { %491 = vmatpush3.msra.mxu0 %v54_v1  ;;  %498 = vmatpush3.msra.mxu1 %v151_v4  ;;  %v147_v8 = vld [vmem:[#allocation5 + $0xd8] sm:$0xff]  ;;  %v145_v10 = vld [vmem:[#allocation5 + $0xc8] sm:$0xff]  ;;  %v144_v11 = vld [vmem:[#allocation5 + $0xc0] sm:$0xff]  ;;  %s678_s28 = scalar_lea.vmem %s422_s2, 128  ;;  %p683_p2 = scmp.lt.s32.totalorder %s422_s2, %s422_s2 }
  0x29   :  { %492 = vmatprep.subr.mxu0 %v709_v0  ;;  %499 = vmatprep.subr.mxu1 %v709_v0  ;;  %v143_v12 = vld [vmem:[#allocation5 + $0xb8] sm:$0xff]  ;;  %v142_v13 = vld [vmem:[#allocation5 + $0xb0] sm:$0xff]  ;;  %v141_v14 = vld [vmem:[#allocation5 + $0xa8] sm:$0xff]  ;;  %p679_p1 = scmp.ne.s32.totalorder %s422_s2, %s678_s28  ;;  %p684_p3 = scmp.lt.s32.totalorder %s678_s28, %s678_s28 }
  0x2a   :  { %493 = vmatpush3.msra.mxu0 %v53_v2  ;;  %500 = vmatpush3.msra.mxu1 %v150_v5  ;;  %v140_v15 = vld [vmem:[#allocation5 + $0xa0] sm:$0xff]  ;;  %v139_v16 = vld [vmem:[#allocation5 + $0x98] sm:$0xff]  ;;  %v138_v17 = vld [vmem:[#allocation5 + $0x90] sm:$0xff] }
  0x2b   :  { %495 = vmatmul.mubr.msk.f32.vlgmr.msra.gmra.mxu0 %vm60_vm1, %v52_v3  ;;  %501 = vmatprep.subr.mxu1 %v709_v0  ;;  %v137_v18 = vld [vmem:[#allocation5 + $0x88] sm:$0xff]  ;;  %v136_v19 = vld [vmem:[#allocation5 + $0x80] sm:$0xff]  ;;  %v244_v20 = vld [vmem:[#allocation5 + $0x178] sm:$0xff]  ;;  %p685_p4 = por %p684_p3, %p683_p2 }
  0x2c   :  { %532 = vmatprep.subr.mxu0 %v709_v0  ;;  %502 = vmatpush3.msra.mxu1 %v149_v6  ;;  %v243_v21 = vld [vmem:[#allocation5 + $0x170] sm:$0xff]  ;;  %v242_v22 = vld [vmem:[#allocation5 + $0x168] sm:$0xff]  ;;  %v241_v23 = vld [vmem:[#allocation5 + $0x160] sm:$0xff] }
  0x2d   :  { %564 = vmatprep.mubr.msk.f32.mxu0 %vm710_vm0, %v709_v0  ;;  %503 = vmatprep.subr.mxu1 %v709_v0  ;;  %v240_v24 = vld [vmem:[#allocation5 + $0x158] sm:$0xff]  ;;  %v239_v25 = vld [vmem:[#allocation5 + $0x150] sm:$0xff]  ;;  %v238_v26 = vld [vmem:[#allocation5 + $0x148] sm:$0xff]  ;;  %p686_p5 = pnand %p685_p4, %p679_p1 }
  0x2e   :  { %504 = vmatpush3.msra.mxu1 %v148_v7  ;;  %533 = vmatpush3.msra.mxu0 %v244_v20  ;;  %v431_v27 = vld [vmem:[#allocation7] ss:$0 sm:$0xff]  ;;  %v236_v33 = vld [vmem:[#allocation5 + $0x138] sm:$0xff]  ;;  %v235_v34 = vld [vmem:[#allocation5 + $0x130] sm:$0xff] }
  0x2f   :  { %505 = vmatprep.subr.mxu1 %v709_v0  ;;  %534 = vmatprep.subr.mxu0 %v709_v0  ;;  %v237_v32 = vld [vmem:[#allocation5 + $0x140] sm:$0xff]  ;;  %v234_v35 = vld [vmem:[#allocation5 + $0x128] sm:$0xff]  ;;  %v232_v37 = vld [vmem:[#allocation5 + $0x118] sm:$0xff] }
  0x30   :  { %506 = vmatpush3.msra.mxu1 %v147_v8  ;;  %535 = vmatpush3.msra.mxu0 %v243_v21  ;;  %v233_v36 = vld [vmem:[#allocation5 + $0x120] sm:$0xff]  ;;  %v231_v38 = vld [vmem:[#allocation5 + $0x110] sm:$0xff]  ;;  %v230_v39 = vld [vmem:[#allocation5 + $0x108] sm:$0xff] }
  0x31   :  { %507 = vmatprep.subr.mxu1 %v709_v0  ;;  %536 = vmatprep.subr.mxu0 %v709_v0  ;;  %v229_v40 = vld [vmem:[#allocation5 + $0x100] sm:$0xff]  ;;  %v337_v41 = vld [vmem:[#allocation5 + $0x1f8] sm:$0xff]  ;;  %v336_v42 = vld [vmem:[#allocation5 + $0x1f0] sm:$0xff] }
  0x32   :  { %508 = vmatpush3.msra.mxu1 %v146_v9  ;;  %537 = vmatpush3.msra.mxu0 %v242_v22  ;;  %v335_v43 = vld [vmem:[#allocation5 + $0x1e8] sm:$0xff]  ;;  %v334_v44 = vld [vmem:[#allocation5 + $0x1e0] sm:$0xff]  ;;  %v333_v45 = vld [vmem:[#allocation5 + $0x1d8] sm:$0xff] }
  0x33   :  { %509 = vmatprep.subr.mxu1 %v709_v0  ;;  %538 = vmatprep.subr.mxu0 %v709_v0  ;;  %v332_v46 = vld [vmem:[#allocation5 + $0x1d0] sm:$0xff]  ;;  %v331_v47 = vld [vmem:[#allocation5 + $0x1c8] sm:$0xff]  ;;  %v433_v48 = vld [vmem:[#allocation7 + $0x1] ss:$0 sm:$0xff] }
  0x34   :  { %510 = vmatpush3.msra.mxu1 %v145_v10  ;;  %539 = vmatpush3.msra.mxu0 %v241_v23  ;;  %v330_v53 = vld [vmem:[#allocation5 + $0x1c0] sm:$0xff]  ;;  %v329_v54 = vld [vmem:[#allocation5 + $0x1b8] sm:$0xff]  ;;  %v328_v55 = vld [vmem:[#allocation5 + $0x1b0] sm:$0xff] }
  0x35   :  { %511 = vmatprep.subr.mxu1 %v709_v0  ;;  %540 = vmatprep.subr.mxu0 %v709_v0  ;;  %v327_v56 = vld [vmem:[#allocation5 + $0x1a8] sm:$0xff]  ;;  %v326_v57 = vld [vmem:[#allocation5 + $0x1a0] sm:$0xff]  ;;  %v325_v58 = vld [vmem:[#allocation5 + $0x198] sm:$0xff] }
  0x36   :  { %512 = vmatpush3.msra.mxu1 %v144_v11  ;;  %541 = vmatpush3.msra.mxu0 %v240_v24  ;;  %v324_v59 = vld [vmem:[#allocation5 + $0x190] sm:$0xff]  ;;  %v323_v60 = vld [vmem:[#allocation5 + $0x188] sm:$0xff]  ;;  %v322_v61 = vld [vmem:[#allocation5 + $0x180] sm:$0xff] }
  0x37   :  { %513 = vmatprep.subr.mxu1 %v709_v0  ;;  %542 = vmatprep.subr.mxu0 %v709_v0  ;;  %v434_v62 = vld [vmem:[#allocation7 + $0x2] ss:$0 sm:$0xff]  ;;  %v435_v4 = vld [vmem:[#allocation7 + $0x3] ss:$0 sm:$0xff] }
  0x38   :  { %514 = vmatpush3.msra.mxu1 %v143_v12  ;;  %543 = vmatpush3.msra.mxu0 %v239_v25 }
  0x39   :  { %515 = vmatprep.subr.mxu1 %v709_v0  ;;  %544 = vmatprep.subr.mxu0 %v709_v0 }
  0x3a   :  { %516 = vmatpush3.msra.mxu1 %v142_v13  ;;  %545 = vmatpush3.msra.mxu0 %v238_v26 }
  0x3b   :  { %517 = vmatprep.subr.mxu1 %v709_v0  ;;  %546 = vmatprep.subr.mxu0 %v709_v0 }
  0x3c   :  { %518 = vmatpush3.msra.mxu1 %v141_v14  ;;  %547 = vmatpush3.msra.mxu0 %v237_v32 }
  0x3d   :  { %519 = vmatprep.subr.mxu1 %v709_v0  ;;  %548 = vmatprep.subr.mxu0 %v709_v0 }
  0x3e   :  { %520 = vmatpush3.msra.mxu1 %v140_v15  ;;  %549 = vmatpush3.msra.mxu0 %v236_v33 }
  0x3f   :  { %521 = vmatprep.subr.mxu1 %v709_v0  ;;  %550 = vmatprep.subr.mxu0 %v709_v0 }
  0x40   :  { %522 = vmatpush3.msra.mxu1 %v139_v16  ;;  %551 = vmatpush3.msra.mxu0 %v235_v34 }
  0x41   :  { %523 = vmatprep.subr.mxu1 %v709_v0  ;;  %552 = vmatprep.subr.mxu0 %v709_v0 }
  0x42   :  { %524 = vmatpush3.msra.mxu1 %v138_v17  ;;  %553 = vmatpush3.msra.mxu0 %v234_v35 }
  0x43   :  { %525 = vmatprep.subr.mxu1 %v709_v0  ;;  %554 = vmatprep.subr.mxu0 %v709_v0 }
  0x44   :  { %526 = vmatpush3.msra.mxu1 %v137_v18  ;;  %555 = vmatpush3.msra.mxu0 %v233_v36 }
  0x45   :  { %527 = vmatprep.subr.mxu1 %v709_v0  ;;  %556 = vmatprep.subr.mxu0 %v709_v0 }
  0x46   :  { %528 = vmatpush3.msra.mxu1 %v136_v19  ;;  %557 = vmatpush3.msra.mxu0 %v232_v37 }
  0x47   :  { %567 = vmatprep.subr.mxu1 %v709_v0  ;;  %558 = vmatprep.subr.mxu0 %v709_v0 }
  0x48   :  { %559 = vmatpush3.msra.mxu0 %v231_v38 }
  0x49   :  { %560 = vmatprep.subr.mxu0 %v709_v0 }
  0x4a   :  { %561 = vmatpush3.msra.mxu0 %v230_v39 }
  0x4b   :  { %562 = vmatprep.subr.mxu0 %v709_v0 }
  0x4c   :  { %563 = vmatpush3.msra.mxu0 %v229_v40 }
  0xeb   :  { %v130_v28 = vpop.f32.mrf.mxu0 }
  0xec   :  { %v131_v29 = vadd.f32 %v431_v27, %v130_v28 }
  0xed   :  { %v496_v30 = vpop.f32.mrf.mxu0 }
  0xee   :  { %610 = vtanh.f32 %v131_v29 }
  0xfb   :  { %v611_v31 = vpop.eup %610 }
  0xfc   :  { %530 = vmatmul.mubr.f32.vlgmr.msra.gmra.mxu1 %v611_v31 }
  0xfd   :  { %599 = vmatprep.mubr.msk.f32.mxu1 %vm710_vm0, %v709_v0  ;;  %568 = vmatpush3.msra.mxu1 %v337_v41 }
  0xfe   :  { %569 = vmatprep.subr.mxu1 %v709_v0 }
  0xff   :  { %570 = vmatpush3.msra.mxu1 %v336_v42 }
 0x100   :  { %571 = vmatprep.subr.mxu1 %v709_v0 }
 0x101   :  { %572 = vmatpush3.msra.mxu1 %v335_v43 }
 0x102   :  { %573 = vmatprep.subr.mxu1 %v709_v0 }
 0x103   :  { %574 = vmatpush3.msra.mxu1 %v334_v44 }
 0x104   :  { %575 = vmatprep.subr.mxu1 %v709_v0 }
 0x105   :  { %576 = vmatpush3.msra.mxu1 %v333_v45 }
 0x106   :  { %577 = vmatprep.subr.mxu1 %v709_v0 }
 0x107   :  { %578 = vmatpush3.msra.mxu1 %v332_v46 }
 0x108   :  { %579 = vmatprep.subr.mxu1 %v709_v0 }
 0x109   :  { %580 = vmatpush3.msra.mxu1 %v331_v47 }
 0x10a   :  { %581 = vmatprep.subr.mxu1 %v709_v0 }
 0x10b   :  { %582 = vmatpush3.msra.mxu1 %v330_v53 }
 0x10c   :  { %583 = vmatprep.subr.mxu1 %v709_v0 }
 0x10d   :  { %584 = vmatpush3.msra.mxu1 %v329_v54 }
 0x10e   :  { %585 = vmatprep.subr.mxu1 %v709_v0 }
 0x10f   :  { %586 = vmatpush3.msra.mxu1 %v328_v55 }
 0x110   :  { %587 = vmatprep.subr.mxu1 %v709_v0 }
 0x111   :  { %588 = vmatpush3.msra.mxu1 %v327_v56 }
 0x112   :  { %589 = vmatprep.subr.mxu1 %v709_v0 }
 0x113   :  { %590 = vmatpush3.msra.mxu1 %v326_v57 }
 0x114   :  { %591 = vmatprep.subr.mxu1 %v709_v0 }
 0x115   :  { %592 = vmatpush3.msra.mxu1 %v325_v58 }
 0x116   :  { %593 = vmatprep.subr.mxu1 %v709_v0 }
 0x117   :  { %594 = vmatpush3.msra.mxu1 %v324_v59 }
 0x118   :  { %595 = vmatprep.subr.mxu1 %v709_v0 }
 0x119   :  { %596 = vmatpush3.msra.mxu1 %v323_v60 }
 0x11a   :  { %597 = vmatprep.subr.mxu1 %v709_v0 }
 0x11b   :  { %598 = vmatpush3.msra.mxu1 %v322_v61 }
 0x1bc   :  { %v223_v49 = vpop.f32.mrf.mxu1 }
 0x1bd   :  { %v224_v50 = vadd.f32 %v433_v48, %v223_v49 }
 0x1be   :  { %v531_v51 = vpop.f32.mrf.mxu1 }
 0x1bf   :  { %612 = vtanh.f32 %v224_v50 }
 0x1cc   :  { %v613_v52 = vpop.eup %612 }
 0x1cd   :  { %565 = vmatmul.mubr.f32.vlgmr.msra.gmra.mxu0 %v613_v52 }
 0x28d   :  { %v316_v63 = vpop.f32.mrf.mxu0 }
 0x28e   :  { %v317_v1 = vadd.f32 %v434_v62, %v316_v63 }
 0x28f   :  { %v566_v2 = vpop.f32.mrf.mxu0 }
 0x290   :  { %614 = vtanh.f32 %v317_v1 }
 0x29d   :  { %v615_v3 = vpop.eup %614 }
 0x29e   :  { %600 = vmatmul.mubr.f32.vlgmr.msra.gmra.mxu1 %v615_v3 }
 0x35e   :  { %v409_v5 = vpop.f32.mrf.mxu1 }
 0x35f   :  { %v410_v6 = vadd.f32 %v435_v4, %v409_v5 }
 0x360   :  { %v601_v7 = vpop.f32.mrf.mxu1 }
 0x361   :  { %616 = vtanh.f32 %v410_v6 }
 0x36e   :  { %v617_v8 = vpop.eup %616 }
 0x36f   :  { %414 = vst [vmem:[#allocation8] sm:$0xff] %v617_v8 }
 0x370   :  { %689 = shalt.err (!%p686_p5)
}
 0x371   :  { %424 = dma.vmem_to_hbm [thread:$0]  %s422_s2, 128, %s805_s3, [#allocation4]  }
 0x372   :  { %702 = dma.done.wait [#allocation4], 128  }
 0x373   :  { %703 = vsyncadd [#allocation4], 4294967168 }
 0x374   :  { %428 = vsyncpa [#allocation3], 1 }
 0x375   :  { %429 = vsyncpa [#allocation6], 1 }
 0x376   :  { %430 = vsyncpa [#allocation4], 1 }

// kernel: tpu_custom_call.1
= control target key start
LH: loop header
LB: loop body
LE: loop exit
PB: predicated region body
PF: predicated region fallthrough
CT: control target
= control target key end

     0   :  { %8 = vsyncpa [#allocation3], 0  ;;  %s802_s0 = inlined_call_operand.hbm [shape: f32[8,16], index: 0, kind: input, shape index: {}]   ;;  %s803_s1 = inlined_call_operand.hbm [shape: f32[4,128,128], index: 1, kind: input, shape index: {}]   ;;  %s804_s2 = inlined_call_operand.hbm [shape: f32[4,128], index: 2, kind: input, shape index: {}]   ;;  %s805_s3 = inlined_call_operand.hbm [shape: f32[8,128], index: 3, kind: output, shape index: {}]  }
   0x1   :  { %9 = vsyncpa [#allocation6], 0 }
   0x2   :  { %10 = vsyncpa [#allocation4], 0  ;;  %s704_s12 = smov [#allocation5]  }
   0x3   :  { %s26_s13 = sshll.u32 %s704_s12, 4  ;;  %s27_s13 = int_to_ptr.vmem [resolvable:$true] %s26_s13 }
   0x4   :  { %s626_s14 = scalar_lea.vmem %s27_s13, 8192  ;;  %p631_p1 = scmp.lt.s32.totalorder %s27_s13, %s27_s13 }
   0x5   :  { %p627_p0 = scmp.ne.s32.totalorder %s27_s13, %s626_s14  ;;  %p632_p2 = scmp.lt.s32.totalorder %s626_s14, %s626_s14 }
   0x7   :  { %p633_p3 = por %p632_p2, %p631_p1 }
   0x9   :  { %p634_p4 = pnand %p633_p3, %p627_p0 }
   0xb   :  { %637 = shalt.err (!%p634_p4)
}
   0xc   :  { %s705_s15 = smov 128   ;;  %s706_s16 = smov 8  }
   0xd   :  { %32 = dma.hbm_to_vmem [thread:$0]  %s803_s1, 8192, %s27_s13, [#allocation6], %s705_s15, %s705_s15, %s706_s16  }
   0xe   :  { %s707_s19 = smov [#allocation2]   ;;  %s708_s21 = smov [#allocation7]  }
   0xf   :  { %s17_s20 = sshll.u32 %s707_s19, 4  ;;  %s39_s22 = sshll.u32 %s708_s21, 4  ;;  %s18_s20 = int_to_ptr.vmem [resolvable:$true] %s17_s20  ;;  %s40_s22 = int_to_ptr.vmem [resolvable:$true] %s39_s22 }
  0x10   :  { %s646_s23 = scalar_lea.vmem %s18_s20, 128  ;;  %p651_p6 = scmp.lt.s32.totalorder %s18_s20, %s18_s20 }
  0x11   :  { %p647_p5 = scmp.ne.s32.totalorder %s18_s20, %s646_s23  ;;  %p652_p7 = scmp.lt.s32.totalorder %s646_s23, %s646_s23 }
  0x13   :  { %p653_p8 = por %p652_p7, %p651_p6 }
  0x15   :  { %p654_p9 = pnand %p653_p8, %p647_p5 }
  0x17   :  { %657 = shalt.err (!%p654_p9)
}
  0x18   :  { %20 = dma.hbm_to_vmem [thread:$0]  %s802_s0, 128, %s18_s20, [#allocation3]  }
  0x19   :  { %s666_s26 = scalar_lea.vmem %s40_s22, 64  ;;  %p671_p11 = scmp.lt.s32.totalorder %s40_s22, %s40_s22 }
  0x1a   :  { %p667_p10 = scmp.ne.s32.totalorder %s40_s22, %s666_s26  ;;  %p672_p12 = scmp.lt.s32.totalorder %s666_s26, %s666_s26 }
  0x1c   :  { %p673_p13 = por %p672_p12, %p671_p11 }
  0x1e   :  { %p674_p0 = pnand %p673_p13, %p667_p10 }
  0x20   :  { %677 = shalt.err (!%p674_p0)
}
  0x21   :  { %42 = dma.hbm_to_vmem [thread:$0]  %s804_s2, 64, %s40_s22, [#allocation6]  }
  0x22   :  { %698 = dma.done.wait [#allocation3], 128  }
  0x23   :  { %699 = vsyncadd [#allocation3], 4294967168 }
  0x24   :  { %700 = dma.done.wait [#allocation6], 8256  }
  0x25   :  { %701 = vsyncadd [#allocation6], 4294959040  ;;  %v709_v0 = vmov 0.0   ;;  %vm710_vm0 = vmmov 0   ;;  %v54_v1 = vld [vmem:[#allocation5 + $0x8] sm:$0xff]  ;;  %v53_v2 = vld [vmem:[#allocation5] sm:$0xff] }
  0x26   :  { %490 = vmatprep.subr.mxu0 %v709_v0  ;;  %494 = vmatprep.mubr.msk.f32.mxu0 %vm710_vm0, %v709_v0  ;;  %v52_v3 = vld [vmem:[#allocation2] sm:$0xff]  ;;  %vm60_vm1 = vcmask 130048   ;;  %v150_v5 = vld [vmem:[#allocation5 + $0xf0] sm:$0xff]  ;;  %v149_v6 = vld [vmem:[#allocation5 + $0xe8] sm:$0xff]  ;;  %s711_s0 = smov [#allocation8]  }
  0x27   :  { %497 = vmatprep.subr.mxu1 %v709_v0  ;;  %529 = vmatprep.mubr.msk.f32.mxu1 %vm710_vm0, %v709_v0  ;;  %v151_v4 = vld [vmem:[#allocation5 + $0xf8] sm:$0xff]  ;;  %v148_v7 = vld [vmem:[#allocation5 + $0xe0] sm:$0xff]  ;;  %v146_v9 = vld [vmem:[#allocation5 + $0xd0] sm:$0xff]  ;;  %s421_s2 = sshll.u32 %s711_s0, 4  ;;  %s422_s2 = int_to_ptr.vmem [resolvable:$true] %s421_s2 }
  0x28   :  { %491 = vmatpush3.msra.mxu0 %v54_v1  ;;  %498 = vmatpush3.msra.mxu1 %v151_v4  ;;  %v147_v8 = vld [vmem:[#allocation5 + $0xd8] sm:$0xff]  ;;  %v145_v10 = vld [vmem:[#allocation5 + $0xc8] sm:$0xff]  ;;  %v144_v11 = vld [vmem:[#allocation5 + $0xc0] sm:$0xff]  ;;  %s678_s28 = scalar_lea.vmem %s422_s2, 128  ;;  %p683_p2 = scmp.lt.s32.totalorder %s422_s2, %s422_s2 }
  0x29   :  { %492 = vmatprep.subr.mxu0 %v709_v0  ;;  %499 = vmatprep.subr.mxu1 %v709_v0  ;;  %v143_v12 = vld [vmem:[#allocation5 + $0xb8] sm:$0xff]  ;;  %v142_v13 = vld [vmem:[#allocation5 + $0xb0] sm:$0xff]  ;;  %v141_v14 = vld [vmem:[#allocation5 + $0xa8] sm:$0xff]  ;;  %p679_p1 = scmp.ne.s32.totalorder %s422_s2, %s678_s28  ;;  %p684_p3 = scmp.lt.s32.totalorder %s678_s28, %s678_s28 }
  0x2a   :  { %493 = vmatpush3.msra.mxu0 %v53_v2  ;;  %500 = vmatpush3.msra.mxu1 %v150_v5  ;;  %v140_v15 = vld [vmem:[#allocation5 + $0xa0] sm:$0xff]  ;;  %v139_v16 = vld [vmem:[#allocation5 + $0x98] sm:$0xff]  ;;  %v138_v17 = vld [vmem:[#allocation5 + $0x90] sm:$0xff] }
  0x2b   :  { %495 = vmatmul.mubr.msk.f32.vlgmr.msra.gmra.mxu0 %vm60_vm1, %v52_v3  ;;  %501 = vmatprep.subr.mxu1 %v709_v0  ;;  %v137_v18 = vld [vmem:[#allocation5 + $0x88] sm:$0xff]  ;;  %v136_v19 = vld [vmem:[#allocation5 + $0x80] sm:$0xff]  ;;  %v244_v20 = vld [vmem:[#allocation5 + $0x178] sm:$0xff]  ;;  %p685_p4 = por %p684_p3, %p683_p2 }
  0x2c   :  { %532 = vmatprep.subr.mxu0 %v709_v0  ;;  %502 = vmatpush3.msra.mxu1 %v149_v6  ;;  %v243_v21 = vld [vmem:[#allocation5 + $0x170] sm:$0xff]  ;;  %v242_v22 = vld [vmem:[#allocation5 + $0x168] sm:$0xff]  ;;  %v241_v23 = vld [vmem:[#allocation5 + $0x160] sm:$0xff] }
  0x2d   :  { %564 = vmatprep.mubr.msk.f32.mxu0 %vm710_vm0, %v709_v0  ;;  %503 = vmatprep.subr.mxu1 %v709_v0  ;;  %v240_v24 = vld [vmem:[#allocation5 + $0x158] sm:$0xff]  ;;  %v239_v25 = vld [vmem:[#allocation5 + $0x150] sm:$0xff]  ;;  %v238_v26 = vld [vmem:[#allocation5 + $0x148] sm:$0xff]  ;;  %p686_p5 = pnand %p685_p4, %p679_p1 }
  0x2e   :  { %504 = vmatpush3.msra.mxu1 %v148_v7  ;;  %533 = vmatpush3.msra.mxu0 %v244_v20  ;;  %v431_v27 = vld [vmem:[#allocation7] ss:$0 sm:$0xff]  ;;  %v236_v33 = vld [vmem:[#allocation5 + $0x138] sm:$0xff]  ;;  %v235_v34 = vld [vmem:[#allocation5 + $0x130] sm:$0xff] }
  0x2f   :  { %505 = vmatprep.subr.mxu1 %v709_v0  ;;  %534 = vmatprep.subr.mxu0 %v709_v0  ;;  %v237_v32 = vld [vmem:[#allocation5 + $0x140] sm:$0xff]  ;;  %v234_v35 = vld [vmem:[#allocation5 + $0x128] sm:$0xff]  ;;  %v232_v37 = vld [vmem:[#allocation5 + $0x118] sm:$0xff] }
  0x30   :  { %506 = vmatpush3.msra.mxu1 %v147_v8  ;;  %535 = vmatpush3.msra.mxu0 %v243_v21  ;;  %v233_v36 = vld [vmem:[#allocation5 + $0x120] sm:$0xff]  ;;  %v231_v38 = vld [vmem:[#allocation5 + $0x110] sm:$0xff]  ;;  %v230_v39 = vld [vmem:[#allocation5 + $0x108] sm:$0xff] }
  0x31   :  { %507 = vmatprep.subr.mxu1 %v709_v0  ;;  %536 = vmatprep.subr.mxu0 %v709_v0  ;;  %v229_v40 = vld [vmem:[#allocation5 + $0x100] sm:$0xff]  ;;  %v337_v41 = vld [vmem:[#allocation5 + $0x1f8] sm:$0xff]  ;;  %v336_v42 = vld [vmem:[#allocation5 + $0x1f0] sm:$0xff] }
  0x32   :  { %508 = vmatpush3.msra.mxu1 %v146_v9  ;;  %537 = vmatpush3.msra.mxu0 %v242_v22  ;;  %v335_v43 = vld [vmem:[#allocation5 + $0x1e8] sm:$0xff]  ;;  %v334_v44 = vld [vmem:[#allocation5 + $0x1e0] sm:$0xff]  ;;  %v333_v45 = vld [vmem:[#allocation5 + $0x1d8] sm:$0xff] }
  0x33   :  { %509 = vmatprep.subr.mxu1 %v709_v0  ;;  %538 = vmatprep.subr.mxu0 %v709_v0  ;;  %v332_v46 = vld [vmem:[#allocation5 + $0x1d0] sm:$0xff]  ;;  %v331_v47 = vld [vmem:[#allocation5 + $0x1c8] sm:$0xff]  ;;  %v433_v48 = vld [vmem:[#allocation7 + $0x1] ss:$0 sm:$0xff] }
  0x34   :  { %510 = vmatpush3.msra.mxu1 %v145_v10  ;;  %539 = vmatpush3.msra.mxu0 %v241_v23  ;;  %v330_v53 = vld [vmem:[#allocation5 + $0x1c0] sm:$0xff]  ;;  %v329_v54 = vld [vmem:[#allocation5 + $0x1b8] sm:$0xff]  ;;  %v328_v55 = vld [vmem:[#allocation5 + $0x1b0] sm:$0xff] }
  0x35   :  { %511 = vmatprep.subr.mxu1 %v709_v0  ;;  %540 = vmatprep.subr.mxu0 %v709_v0  ;;  %v327_v56 = vld [vmem:[#allocation5 + $0x1a8] sm:$0xff]  ;;  %v326_v57 = vld [vmem:[#allocation5 + $0x1a0] sm:$0xff]  ;;  %v325_v58 = vld [vmem:[#allocation5 + $0x198] sm:$0xff] }
  0x36   :  { %512 = vmatpush3.msra.mxu1 %v144_v11  ;;  %541 = vmatpush3.msra.mxu0 %v240_v24  ;;  %v324_v59 = vld [vmem:[#allocation5 + $0x190] sm:$0xff]  ;;  %v323_v60 = vld [vmem:[#allocation5 + $0x188] sm:$0xff]  ;;  %v322_v61 = vld [vmem:[#allocation5 + $0x180] sm:$0xff] }
  0x37   :  { %513 = vmatprep.subr.mxu1 %v709_v0  ;;  %542 = vmatprep.subr.mxu0 %v709_v0  ;;  %v434_v62 = vld [vmem:[#allocation7 + $0x2] ss:$0 sm:$0xff]  ;;  %v435_v4 = vld [vmem:[#allocation7 + $0x3] ss:$0 sm:$0xff] }
  0x38   :  { %514 = vmatpush3.msra.mxu1 %v143_v12  ;;  %543 = vmatpush3.msra.mxu0 %v239_v25 }
  0x39   :  { %515 = vmatprep.subr.mxu1 %v709_v0  ;;  %544 = vmatprep.subr.mxu0 %v709_v0 }
  0x3a   :  { %516 = vmatpush3.msra.mxu1 %v142_v13  ;;  %545 = vmatpush3.msra.mxu0 %v238_v26 }
  0x3b   :  { %517 = vmatprep.subr.mxu1 %v709_v0  ;;  %546 = vmatprep.subr.mxu0 %v709_v0 }
  0x3c   :  { %518 = vmatpush3.msra.mxu1 %v141_v14  ;;  %547 = vmatpush3.msra.mxu0 %v237_v32 }
  0x3d   :  { %519 = vmatprep.subr.mxu1 %v709_v0  ;;  %548 = vmatprep.subr.mxu0 %v709_v0 }
  0x3e   :  { %520 = vmatpush3.msra.mxu1 %v140_v15  ;;  %549 = vmatpush3.msra.mxu0 %v236_v33 }
  0x3f   :  { %521 = vmatprep.subr.mxu1 %v709_v0  ;;  %550 = vmatprep.subr.mxu0 %v709_v0 }
  0x40   :  { %522 = vmatpush3.msra.mxu1 %v139_v16  ;;  %551 = vmatpush3.msra.mxu0 %v235_v34 }
  0x41   :  { %523 = vmatprep.subr.mxu1 %v709_v0  ;;  %552 = vmatprep.subr.mxu0 %v709_v0 }
  0x42   :  { %524 = vmatpush3.msra.mxu1 %v138_v17  ;;  %553 = vmatpush3.msra.mxu0 %v234_v35 }
  0x43   :  { %525 = vmatprep.subr.mxu1 %v709_v0  ;;  %554 = vmatprep.subr.mxu0 %v709_v0 }
  0x44   :  { %526 = vmatpush3.msra.mxu1 %v137_v18  ;;  %555 = vmatpush3.msra.mxu0 %v233_v36 }
  0x45   :  { %527 = vmatprep.subr.mxu1 %v709_v0  ;;  %556 = vmatprep.subr.mxu0 %v709_v0 }
  0x46   :  { %528 = vmatpush3.msra.mxu1 %v136_v19  ;;  %557 = vmatpush3.msra.mxu0 %v232_v37 }
  0x47   :  { %567 = vmatprep.subr.mxu1 %v709_v0  ;;  %558 = vmatprep.subr.mxu0 %v709_v0 }
  0x48   :  { %559 = vmatpush3.msra.mxu0 %v231_v38 }
  0x49   :  { %560 = vmatprep.subr.mxu0 %v709_v0 }
  0x4a   :  { %561 = vmatpush3.msra.mxu0 %v230_v39 }
  0x4b   :  { %562 = vmatprep.subr.mxu0 %v709_v0 }
  0x4c   :  { %563 = vmatpush3.msra.mxu0 %v229_v40 }
  0xeb   :  { %v130_v28 = vpop.f32.mrf.mxu0 }
  0xec   :  { %v131_v29 = vadd.f32 %v431_v27, %v130_v28 }
  0xed   :  { %v496_v30 = vpop.f32.mrf.mxu0 }
  0xee   :  { %610 = vtanh.f32 %v131_v29 }
  0xfb   :  { %v611_v31 = vpop.eup %610 }
  0xfc   :  { %530 = vmatmul.mubr.f32.vlgmr.msra.gmra.mxu1 %v611_v31 }
  0xfd   :  { %599 = vmatprep.mubr.msk.f32.mxu1 %vm710_vm0, %v709_v0  ;;  %568 = vmatpush3.msra.mxu1 %v337_v41 }
  0xfe   :  { %569 = vmatprep.subr.mxu1 %v709_v0 }
  0xff   :  { %570 = vmatpush3.msra.mxu1 %v336_v42 }
 0x100   :  { %571 = vmatprep.subr.mxu1 %v709_v0 }
 0x101   :  { %572 = vmatpush3.msra.mxu1 %v335_v43 }
 0x102   :  { %573 = vmatprep.subr.mxu1 %v709_v0 }
 0x103   :  { %574 = vmatpush3.msra.mxu1 %v334_v44 }
 0x104   :  { %575 = vmatprep.subr.mxu1 %v709_v0 }
 0x105   :  { %576 = vmatpush3.msra.mxu1 %v333_v45 }
 0x106   :  { %577 = vmatprep.subr.mxu1 %v709_v0 }
 0x107   :  { %578 = vmatpush3.msra.mxu1 %v332_v46 }
 0x108   :  { %579 = vmatprep.subr.mxu1 %v709_v0 }
 0x109   :  { %580 = vmatpush3.msra.mxu1 %v331_v47 }
 0x10a   :  { %581 = vmatprep.subr.mxu1 %v709_v0 }
 0x10b   :  { %582 = vmatpush3.msra.mxu1 %v330_v53 }
 0x10c   :  { %583 = vmatprep.subr.mxu1 %v709_v0 }
 0x10d   :  { %584 = vmatpush3.msra.mxu1 %v329_v54 }
 0x10e   :  { %585 = vmatprep.subr.mxu1 %v709_v0 }
 0x10f   :  { %586 = vmatpush3.msra.mxu1 %v328_v55 }
 0x110   :  { %587 = vmatprep.subr.mxu1 %v709_v0 }
 0x111   :  { %588 = vmatpush3.msra.mxu1 %v327_v56 }
 0x112   :  { %589 = vmatprep.subr.mxu1 %v709_v0 }
 0x113   :  { %590 = vmatpush3.msra.mxu1 %v326_v57 }
 0x114   :  { %591 = vmatprep.subr.mxu1 %v709_v0 }
 0x115   :  { %592 = vmatpush3.msra.mxu1 %v325_v58 }
 0x116   :  { %593 = vmatprep.subr.mxu1 %v709_v0 }
 0x117   :  { %594 = vmatpush3.msra.mxu1 %v324_v59 }
 0x118   :  { %595 = vmatprep.subr.mxu1 %v709_v0 }
 0x119   :  { %596 = vmatpush3.msra.mxu1 %v323_v60 }
 0x11a   :  { %597 = vmatprep.subr.mxu1 %v709_v0 }
 0x11b   :  { %598 = vmatpush3.msra.mxu1 %v322_v61 }
 0x1bc   :  { %v223_v49 = vpop.f32.mrf.mxu1 }
 0x1bd   :  { %v224_v50 = vadd.f32 %v433_v48, %v223_v49 }
 0x1be   :  { %v531_v51 = vpop.f32.mrf.mxu1 }
 0x1bf   :  { %612 = vtanh.f32 %v224_v50 }
 0x1cc   :  { %v613_v52 = vpop.eup %612 }
 0x1cd   :  { %565 = vmatmul.mubr.f32.vlgmr.msra.gmra.mxu0 %v613_v52 }
 0x28d   :  { %v316_v63 = vpop.f32.mrf.mxu0 }
 0x28e   :  { %v317_v1 = vadd.f32 %v434_v62, %v316_v63 }
 0x28f   :  { %v566_v2 = vpop.f32.mrf.mxu0 }
 0x290   :  { %614 = vtanh.f32 %v317_v1 }
 0x29d   :  { %v615_v3 = vpop.eup %614 }
 0x29e   :  { %600 = vmatmul.mubr.f32.vlgmr.msra.gmra.mxu1 %v615_v3 }
 0x35e   :  { %v409_v5 = vpop.f32.mrf.mxu1 }
 0x35f   :  { %v410_v6 = vadd.f32 %v435_v4, %v409_v5 }
 0x360   :  { %v601_v7 = vpop.f32.mrf.mxu1 }
 0x361   :  { %616 = vtanh.f32 %v410_v6 }
 0x36e   :  { %v617_v8 = vpop.eup %616 }
 0x36f   :  { %414 = vst [vmem:[#allocation8] sm:$0xff] %v617_v8 }
 0x370   :  { %689 = shalt.err (!%p686_p5)
}
 0x371   :  { %424 = dma.vmem_to_hbm [thread:$0]  %s422_s2, 128, %s805_s3, [#allocation4]  }
 0x372   :  { %702 = dma.done.wait [#allocation4], 128  }
 0x373   :  { %703 = vsyncadd [#allocation4], 4294967168 }
 0x374   :  { %428 = vsyncpa [#allocation3], 1 }
 0x375   :  { %429 = vsyncpa [#allocation6], 1 }
 0x376   :  { %430 = vsyncpa [#allocation4], 1 }

</bundles_post_ra>
